<compile_context>
chip_gen: v6e
topology: v6e:2x2x1
jax: 0.10.0
libtpu: 0.0.40
codegen_flags: <defaults>
</compile_context>

<pallas_src>
import functools

import jax
import jax.numpy as jnp
from jax import lax
from jax.experimental import pallas as pl
from jax.experimental.pallas import tpu as pltpu


def _round_up(x: int, m: int) -> int:
    return (x + m - 1) // m * m


def _fold8(x):
    """(tn, C) f32 -> (8, C) partial sums over row groups of 8.

    tn is a multiple of 8 by construction.  Static sublane-aligned slices +
    adds: pure VALU work per grid step; the cross-sublane reduction is
    deferred to the once-only epilogue.
    """
    acc = x[0:8]
    for r in range(8, x.shape[0], 8):
        acc = acc + x[r:r + 8]
    return acc


def _barlow_twins_kernel(za_ref, zb_ref, out_ref,
                         g_acc, sa_acc, ssa_acc, sb_acc, ssb_acc, sab_acc,
                         *, lambda_param: float, n_rows: int, n_dj: int,
                         ragged: bool):
    dj = pl.program_id(0)            # output-column block (parallel axis)
    i = pl.program_id(1)             # row-tile sweep (reduction axis)

    tn = za_ref.shape[0]
    dk = zb_ref.shape[1]

    @pl.when(i == 0)
    def _init():
        g_acc[...] = jnp.zeros_like(g_acc)
        sa_acc[...] = jnp.zeros_like(sa_acc)
        ssa_acc[...] = jnp.zeros_like(ssa_acc)
        sb_acc[...] = jnp.zeros_like(sb_acc)
        ssb_acc[...] = jnp.zeros_like(ssb_acc)
        sab_acc[...] = jnp.zeros_like(sab_acc)

    za = za_ref[...]                 # (tn, D)  native dtype (bf16 / f32)
    zb = zb_ref[...]                 # (tn, dk) native dtype

    rmask = None
    if ragged:                       # static: traced only when N % tn != 0
        rows = i * tn + lax.broadcasted_iota(jnp.int32, (tn, 1), 0)
        rmask = rows < n_rows
        # Out-of-range rows of a partial block are unspecified -> zero them.
        za = jnp.where(rmask, za, jnp.zeros_like(za))
        zb = jnp.where(rmask, zb, jnp.zeros_like(zb))

    # Gram accumulation on the MXU with native-dtype operands, contracting
    # dim 0 of both tiles => Za_tile^T @ Zb_tile as a transposed-LHS matmul
    # (no materialized transpose on the streaming path).
    g_acc[...] += lax.dot_general(
        za, zb, (((0,), (0,)), ((), ())),
        preferred_element_type=jnp.float32)

    # f32 VPU column statistics as 8-row sublane partials.
    za_f = za.astype(jnp.float32)
    zb_f = zb.astype(jnp.float32)
    sa_acc[...] += _fold8(za_f)
    ssa_acc[...] += _fold8(za_f * za_f)
    sb_acc[...] += _fold8(zb_f)
    ssb_acc[...] += _fold8(zb_f * zb_f)

    # Cross term restricted to this column block (feeds the diagonal of c).
    if n_dj == 1:
        za_blk = za_f
    else:
        zab = za_ref[:, pl.ds(pl.multiple_of(dj * dk, dk), dk)]
        if ragged:
            zab = jnp.where(rmask, zab, jnp.zeros_like(zab))
        za_blk = zab.astype(jnp.float32)
    sab_acc[...] += _fold8(za_blk * zb_f)

    @pl.when(i == pl.num_programs(1) - 1)
    def _finalize():
        n = float(n_rows)
        inv_n = 1.0 / n
        # torch.Tensor.std defaults to ddof=1; a single row gives NaN exactly
        # like the reference.
        inv_nm1 = 1.0 / (n - 1.0) if n_rows > 1 else float("nan")

        # One cross-sublane reduce per statistic (row forms).
        sa = jnp.sum(sa_acc[...], axis=0, keepdims=True)       # (1, D)
        ssa = jnp.sum(ssa_acc[...], axis=0, keepdims=True)     # (1, D)
        sb = jnp.sum(sb_acc[...], axis=0, keepdims=True)       # (1, dk)
        ssb = jnp.sum(ssb_acc[...], axis=0, keepdims=True)     # (1, dk)
        sab = jnp.sum(sab_acc[...], axis=0, keepdims=True)     # (1, dk)

        inv_b = lax.rsqrt((ssb - sb * sb * inv_n) * inv_nm1)   # (1, dk), EUP

        # (D, 1) column forms of the a-side stats: tiny K=8 transposed-LHS
        # fold of the (8, D) partial slabs (result is only D elements wide;
        # no Dp^2 outer products).
        ones_f = jnp.ones((8, 128), jnp.float32)
        fold = (((0,), (0,)), ((), ()))
        sa_col = lax.dot_general(sa_acc[...], ones_f, fold,
                                 preferred_element_type=jnp.float32)[:, 0:1]
        ssa_col = lax.dot_general(ssa_acc[...], ones_f, fold,
                                  preferred_element_type=jnp.float32)[:, 0:1]
        inv_a_col = lax.rsqrt((ssa_col - sa_col * sa_col * inv_n) * inv_nm1)

        # c = (G - sa_col * sb_row / n) * inv_a_col * inv_b_row / n,
        # realized as folded VPU broadcast multiplies.
        c = (g_acc[...] - sa_col * (sb * inv_n)) * inv_a_col * (inv_b * inv_n)
        total_sq = jnp.sum(c * c)

        # Diagonal of this column block straight from (1, dk) vectors.
        if n_dj == 1:
            sa_blk, ssa_blk = sa, ssa
        else:
            sa_blk = lax.dynamic_slice_in_dim(sa, dj * dk, dk, axis=1)
            ssa_blk = lax.dynamic_slice_in_dim(ssa, dj * dk, dk, axis=1)
        inv_a_blk = lax.rsqrt((ssa_blk - sa_blk * sa_blk * inv_n) * inv_nm1)
        d = (sab - sa_blk * sb * inv_n) * inv_a_blk * (inv_b * inv_n)
        diag_term = jnp.sum((d - 1.0) ** 2 - lambda_param * d * d)

        # loss contribution of this column block:
        #   lambda * sum(c^2) + sum_diag((c - 1)^2 - lambda * c^2)
        partial = lambda_param * total_sq + diag_term

        # Lane-dense (8, 128) output block: the scalar sits at [0, 0], the
        # rest is zero so the wrapper can just jnp.sum the whole array.
        rr = lax.broadcasted_iota(jnp.int32, out_ref.shape, 0)
        cc = lax.broadcasted_iota(jnp.int32, out_ref.shape, 1)
        out_ref[...] = jnp.where((rr == 0) & (cc == 0), partial, 0.0)


def _estimate_vmem_bytes(D, dk, tn, itemsize):
    in_bytes = 2 * tn * (D + dk) * itemsize       # double-buffered input tiles
    acc_bytes = D * dk * 4                        # Gram accumulator
    stat_bytes = (2 * 8 * D + 3 * 8 * dk) * 4     # (8, C) stat partials
    epi_bytes = 2 * D * dk * 4                    # c / c^2 epilogue temporaries
    out_bytes = 2 * 8 * 128 * 4
    return in_bytes + acc_bytes + stat_bytes + epi_bytes + out_bytes + (2 << 20)


def barlow_twins_loss(z_a: jax.Array, z_b: jax.Array,
                      lambda_param: float = 0.005,
                      row_tile: int | None = None,
                      col_tile: int | None = None) -> jax.Array:
    B, T, D = z_a.shape
    N = B * T

    # No wrapper-side pad / upcast (that would be a full extra HBM pass over
    # both (N, D) slabs); ragged tiles are handled in-kernel.
    za = z_a.reshape(N, D)
    zb = z_b.reshape(N, D)

    itemsize = jnp.dtype(za.dtype).itemsize
    pack = {4: 8, 2: 16, 1: 32}.get(itemsize, 8)   # sublane packing granule

    try:
        vmem_cap = int(pltpu.get_tpu_info().vmem_capacity_bytes)
    except Exception:
        vmem_cap = 64 * 1024 * 1024                # conservative (v7x-sized)
    budget = vmem_cap - (8 << 20)                  # headroom for Mosaic scratch

    if row_tile is None:
        row_tile = 1024 if D <= 1024 else 512
    tn = min(row_tile, _round_up(N, pack))
    tn = max(pack, tn - tn % pack)

    # Output-column tiling: gives v7x (64 MiB VMEM, 2 TensorCores) a parallel
    # grid axis and keeps the (D, dk) accumulator + epilogue in budget.  On
    # big-VMEM single-core parts keep dk = D unless VMEM forces tiling
    # (column tiling re-reads z_a once per column block).
    if col_tile is None:
        col_tile = 512
    dk = D
    if D % 128 == 0 and D > col_tile:
        small_vmem = vmem_cap <= (64 << 20)        # v7x-class part
        if small_vmem or _estimate_vmem_bytes(D, D, tn, itemsize) > budget:
            for cand in (col_tile, 256, 128):
                if cand < D and D % cand == 0:
                    dk = cand
                    if _estimate_vmem_bytes(D, dk, tn, itemsize) <= budget:
                        break
    n_dj = D // dk

    # Shrink the row tile if the working set still does not fit.
    while tn > pack and _estimate_vmem_bytes(D, dk, tn, itemsize) > budget:
        tn = max(pack, (tn // 2) - (tn // 2) % pack)

    n_i = pl.cdiv(N, tn)
    ragged = (N % tn) != 0

    vmem_limit = int(min(max(_estimate_vmem_bytes(D, dk, tn, itemsize),
                             32 << 20), budget))

    kernel = functools.partial(
        _barlow_twins_kernel,
        lambda_param=float(lambda_param), n_rows=N, n_dj=n_dj, ragged=ragged)

    partials = pl.pallas_call(
        kernel,
        out_shape=jax.ShapeDtypeStruct((n_dj * 8, 128), jnp.float32),
        grid_spec=pltpu.PrefetchScalarGridSpec(
            num_scalar_prefetch=0,
            grid=(n_dj, n_i),
            in_specs=[
                pl.BlockSpec((tn, D), lambda dj, i: (i, 0)),
                pl.BlockSpec((tn, dk), lambda dj, i: (i, dj)),
            ],
            out_specs=pl.BlockSpec((8, 128), lambda dj, i: (dj, 0)),
            scratch_shapes=[
                pltpu.VMEM((D, dk), jnp.float32),   # G = Za^T Zb column block
                pltpu.VMEM((8, D), jnp.float32),    # sum_a partials
                pltpu.VMEM((8, D), jnp.float32),    # sumsq_a partials
                pltpu.VMEM((8, dk), jnp.float32),   # sum_b partials
                pltpu.VMEM((8, dk), jnp.float32),   # sumsq_b partials
                pltpu.VMEM((8, dk), jnp.float32),   # sum_ab partials (diag)
            ]),
        compiler_params=pltpu.CompilerParams(
            dimension_semantics=("parallel", "arbitrary"),
            vmem_limit_bytes=vmem_limit),
    )(za, zb)

    return jnp.sum(partials)


def _reference(z_a, z_b, lambda_param=0.005):
    B, T, D = z_a.shape
    za = z_a.reshape(B * T, D).astype(jnp.float32)
    zb = z_b.reshape(B * T, D).astype(jnp.float32)
    N = za.shape[0]
    za_n = (za - za.mean(0)) / jnp.std(za, axis=0, ddof=1)
    zb_n = (zb - zb.mean(0)) / jnp.std(zb, axis=0, ddof=1)
    c = za_n.T @ zb_n / N
    eye = jnp.eye(D)
    c_diff = (c - eye) ** 2
    c_diff = jnp.where(eye.astype(bool), c_diff, c_diff * lambda_param)
    return c_diff.sum()


if __name__ == "__main__":
    key = jax.random.PRNGKey(0)
    k_a, k_b = jax.random.split(key)
    B, T, D = 2, 8, 32
    z_a = jax.random.normal(k_a, (B, T, D), dtype=jnp.float32)
    z_b = jax.random.normal(k_b, (B, T, D), dtype=jnp.float32)

    loss = barlow_twins_loss(z_a, z_b, lambda_param=0.005)
    jax.block_until_ready(loss)

    ref = _reference(z_a, z_b, lambda_param=0.005)
    assert jnp.allclose(loss, ref, rtol=1e-5, atol=1e-5), (loss, ref)
    print("KERNEL_OK")
</pallas_src>

<mosaic_0001>
module attributes {stable_mosaic.version = 11 : i64} {
  func.func @_barlow_twins_kernel(%arg0: i32, %arg1: i32, %arg2: memref<16x32xf32, #tpu.memory_space<vmem>>, %arg3: memref<16x32xf32, #tpu.memory_space<vmem>>, %arg4: memref<8x128xf32, #tpu.memory_space<vmem>>, %arg5: memref<32x32xf32, #tpu.memory_space<vmem>>, %arg6: memref<8x32xf32, #tpu.memory_space<vmem>>, %arg7: memref<8x32xf32, #tpu.memory_space<vmem>>, %arg8: memref<8x32xf32, #tpu.memory_space<vmem>>, %arg9: memref<8x32xf32, #tpu.memory_space<vmem>>, %arg10: memref<8x32xf32, #tpu.memory_space<vmem>>) attributes {dimension_semantics = [#tpu.dimension_semantics<parallel>, #tpu.dimension_semantics<arbitrary>], iteration_bounds = array<i64: 1, 1>, scalar_prefetch = 0 : i64, scratch_operands = 6 : i64, tpu.core_type = #tpu.core_type<tc>, window_params = [{transform_indices = @transform_0, window_bounds = array<i64: 16, 32>}, {transform_indices = @transform_1, window_bounds = array<i64: 16, 32>}, {transform_indices = @transform_2, window_bounds = array<i64: 8, 128>}]} {
    %c0_i32 = arith.constant 0 : i32
    %0 = arith.cmpi eq, %arg1, %c0_i32 : i32
    %1 = arith.extui %0 : i1 to i32
    %c0_i32_0 = arith.constant 0 : i32
    %2 = arith.cmpi ne, %1, %c0_i32_0 : i32
    scf.if %2 {
      %cst_30 = arith.constant 0.000000e+00 : f32
      %45 = vector.broadcast %cst_30 : f32 to vector<32x32xf32>
      %c0_31 = arith.constant 0 : index
      %c0_32 = arith.constant 0 : index
      %46 = vector.load %arg5[%c0_31, %c0_32] : memref<32x32xf32, #tpu.memory_space<vmem>>, vector<32x32xf32>
      tpu.vector_store %arg5[%c0_31, %c0_32], %45 {strides = array<i32>} : memref<32x32xf32, #tpu.memory_space<vmem>>, vector<32x32xf32>,
      %cst_33 = arith.constant 0.000000e+00 : f32
      %47 = vector.broadcast %cst_33 : f32 to vector<8x32xf32>
      %c0_34 = arith.constant 0 : index
      %c0_35 = arith.constant 0 : index
      %48 = vector.load %arg6[%c0_34, %c0_35] : memref<8x32xf32, #tpu.memory_space<vmem>>, vector<8x32xf32>
      tpu.vector_store %arg6[%c0_34, %c0_35], %47 {strides = array<i32>} : memref<8x32xf32, #tpu.memory_space<vmem>>, vector<8x32xf32>,
      %cst_36 = arith.constant 0.000000e+00 : f32
      %49 = vector.broadcast %cst_36 : f32 to vector<8x32xf32>
      %c0_37 = arith.constant 0 : index
      %c0_38 = arith.constant 0 : index
      %50 = vector.load %arg7[%c0_37, %c0_38] : memref<8x32xf32, #tpu.memory_space<vmem>>, vector<8x32xf32>
      tpu.vector_store %arg7[%c0_37, %c0_38], %49 {strides = array<i32>} : memref<8x32xf32, #tpu.memory_space<vmem>>, vector<8x32xf32>,
      %cst_39 = arith.constant 0.000000e+00 : f32
      %51 = vector.broadcast %cst_39 : f32 to vector<8x32xf32>
      %c0_40 = arith.constant 0 : index
      %c0_41 = arith.constant 0 : index
      %52 = vector.load %arg8[%c0_40, %c0_41] : memref<8x32xf32, #tpu.memory_space<vmem>>, vector<8x32xf32>
      tpu.vector_store %arg8[%c0_40, %c0_41], %51 {strides = array<i32>} : memref<8x32xf32, #tpu.memory_space<vmem>>, vector<8x32xf32>,
      %cst_42 = arith.constant 0.000000e+00 : f32
      %53 = vector.broadcast %cst_42 : f32 to vector<8x32xf32>
      %c0_43 = arith.constant 0 : index
      %c0_44 = arith.constant 0 : index
      %54 = vector.load %arg9[%c0_43, %c0_44] : memref<8x32xf32, #tpu.memory_space<vmem>>, vector<8x32xf32>
      tpu.vector_store %arg9[%c0_43, %c0_44], %53 {strides = array<i32>} : memref<8x32xf32, #tpu.memory_space<vmem>>, vector<8x32xf32>,
      %cst_45 = arith.constant 0.000000e+00 : f32
      %55 = vector.broadcast %cst_45 : f32 to vector<8x32xf32>
      %c0_46 = arith.constant 0 : index
      %c0_47 = arith.constant 0 : index
      %56 = vector.load %arg10[%c0_46, %c0_47] : memref<8x32xf32, #tpu.memory_space<vmem>>, vector<8x32xf32>
      tpu.vector_store %arg10[%c0_46, %c0_47], %55 {strides = array<i32>} : memref<8x32xf32, #tpu.memory_space<vmem>>, vector<8x32xf32>,
    } else {
    }
    %c0 = arith.constant 0 : index
    %c0_1 = arith.constant 0 : index
    %3 = vector.load %arg2[%c0, %c0_1] : memref<16x32xf32, #tpu.memory_space<vmem>>, vector<16x32xf32>
    %c0_2 = arith.constant 0 : index
    %c0_3 = arith.constant 0 : index
    %4 = vector.load %arg3[%c0_2, %c0_3] : memref<16x32xf32, #tpu.memory_space<vmem>>, vector<16x32xf32>
    %c0_4 = arith.constant 0 : index
    %c0_5 = arith.constant 0 : index
    %5 = vector.load %arg5[%c0_4, %c0_5] : memref<32x32xf32, #tpu.memory_space<vmem>>, vector<32x32xf32>
    %cst = arith.constant dense<0.000000e+00> : vector<32x32xf32>
    %6 = tpu.matmul %3, %4, %cst {dimension_numbers = #tpu.dot_dimension_numbers<[0], [0], [1], [1], [0, 1, 1, 1], [], []>} : vector<16x32xf32>, vector<16x32xf32>, vector<32x32xf32> -> vector<32x32xf32>
    %7 = arith.addf %5, %6 : vector<32x32xf32>
    %c0_6 = arith.constant 0 : index
    %c0_7 = arith.constant 0 : index
    %8 = vector.load %arg5[%c0_6, %c0_7] : memref<32x32xf32, #tpu.memory_space<vmem>>, vector<32x32xf32>
    tpu.vector_store %arg5[%c0_6, %c0_7], %7 {strides = array<i32>} : memref<32x32xf32, #tpu.memory_space<vmem>>, vector<32x32xf32>,
    %c0_8 = arith.constant 0 : index
    %c0_9 = arith.constant 0 : index
    %9 = vector.load %arg6[%c0_8, %c0_9] : memref<8x32xf32, #tpu.memory_space<vmem>>, vector<8x32xf32>
    %10 = vector.extract_strided_slice %3 {offsets = [0, 0], sizes = [8, 32], strides = [1, 1]} : vector<16x32xf32> to vector<8x32xf32>
    %11 = vector.extract_strided_slice %3 {offsets = [8, 0], sizes = [8, 32], strides = [1, 1]} : vector<16x32xf32> to vector<8x32xf32>
    %12 = arith.addf %10, %11 : vector<8x32xf32>
    %13 = arith.addf %9, %12 : vector<8x32xf32>
    %c0_10 = arith.constant 0 : index
    %c0_11 = arith.constant 0 : index
    %14 = vector.load %arg6[%c0_10, %c0_11] : memref<8x32xf32, #tpu.memory_space<vmem>>, vector<8x32xf32>
    tpu.vector_store %arg6[%c0_10, %c0_11], %13 {strides = array<i32>} : memref<8x32xf32, #tpu.memory_space<vmem>>, vector<8x32xf32>,
    %c0_12 = arith.constant 0 : index
    %c0_13 = arith.constant 0 : index
    %15 = vector.load %arg7[%c0_12, %c0_13] : memref<8x32xf32, #tpu.memory_space<vmem>>, vector<8x32xf32>
    %16 = arith.mulf %3, %3 : vector<16x32xf32>
    %17 = vector.extract_strided_slice %16 {offsets = [0, 0], sizes = [8, 32], strides = [1, 1]} : vector<16x32xf32> to vector<8x32xf32>
    %18 = vector.extract_strided_slice %16 {offsets = [8, 0], sizes = [8, 32], strides = [1, 1]} : vector<16x32xf32> to vector<8x32xf32>
    %19 = arith.addf %17, %18 : vector<8x32xf32>
    %20 = arith.addf %15, %19 : vector<8x32xf32>
    %c0_14 = arith.constant 0 : index
    %c0_15 = arith.constant 0 : index
    %21 = vector.load %arg7[%c0_14, %c0_15] : memref<8x32xf32, #tpu.memory_space<vmem>>, vector<8x32xf32>
    tpu.vector_store %arg7[%c0_14, %c0_15], %20 {strides = array<i32>} : memref<8x32xf32, #tpu.memory_space<vmem>>, vector<8x32xf32>,
    %c0_16 = arith.constant 0 : index
    %c0_17 = arith.constant 0 : index
    %22 = vector.load %arg8[%c0_16, %c0_17] : memref<8x32xf32, #tpu.memory_space<vmem>>, vector<8x32xf32>
    %23 = vector.extract_strided_slice %4 {offsets = [0, 0], sizes = [8, 32], strides = [1, 1]} : vector<16x32xf32> to vector<8x32xf32>
    %24 = vector.extract_strided_slice %4 {offsets = [8, 0], sizes = [8, 32], strides = [1, 1]} : vector<16x32xf32> to vector<8x32xf32>
    %25 = arith.addf %23, %24 : vector<8x32xf32>
    %26 = arith.addf %22, %25 : vector<8x32xf32>
    %c0_18 = arith.constant 0 : index
    %c0_19 = arith.constant 0 : index
    %27 = vector.load %arg8[%c0_18, %c0_19] : memref<8x32xf32, #tpu.memory_space<vmem>>, vector<8x32xf32>
    tpu.vector_store %arg8[%c0_18, %c0_19], %26 {strides = array<i32>} : memref<8x32xf32, #tpu.memory_space<vmem>>, vector<8x32xf32>,
    %c0_20 = arith.constant 0 : index
    %c0_21 = arith.constant 0 : index
    %28 = vector.load %arg9[%c0_20, %c0_21] : memref<8x32xf32, #tpu.memory_space<vmem>>, vector<8x32xf32>
    %29 = arith.mulf %4, %4 : vector<16x32xf32>
    %30 = vector.extract_strided_slice %29 {offsets = [0, 0], sizes = [8, 32], strides = [1, 1]} : vector<16x32xf32> to vector<8x32xf32>
    %31 = vector.extract_strided_slice %29 {offsets = [8, 0], sizes = [8, 32], strides = [1, 1]} : vector<16x32xf32> to vector<8x32xf32>
    %32 = arith.addf %30, %31 : vector<8x32xf32>
    %33 = arith.addf %28, %32 : vector<8x32xf32>
    %c0_22 = arith.constant 0 : index
    %c0_23 = arith.constant 0 : index
    %34 = vector.load %arg9[%c0_22, %c0_23] : memref<8x32xf32, #tpu.memory_space<vmem>>, vector<8x32xf32>
    tpu.vector_store %arg9[%c0_22, %c0_23], %33 {strides = array<i32>} : memref<8x32xf32, #tpu.memory_space<vmem>>, vector<8x32xf32>,
    %c0_24 = arith.constant 0 : index
    %c0_25 = arith.constant 0 : index
    %35 = vector.load %arg10[%c0_24, %c0_25] : memref<8x32xf32, #tpu.memory_space<vmem>>, vector<8x32xf32>
    %36 = arith.mulf %3, %4 : vector<16x32xf32>
    %37 = vector.extract_strided_slice %36 {offsets = [0, 0], sizes = [8, 32], strides = [1, 1]} : vector<16x32xf32> to vector<8x32xf32>
    %38 = vector.extract_strided_slice %36 {offsets = [8, 0], sizes = [8, 32], strides = [1, 1]} : vector<16x32xf32> to vector<8x32xf32>
    %39 = arith.addf %37, %38 : vector<8x32xf32>
    %40 = arith.addf %35, %39 : vector<8x32xf32>
    %c0_26 = arith.constant 0 : index
    %c0_27 = arith.constant 0 : index
    %41 = vector.load %arg10[%c0_26, %c0_27] : memref<8x32xf32, #tpu.memory_space<vmem>>, vector<8x32xf32>
    tpu.vector_store %arg10[%c0_26, %c0_27], %40 {strides = array<i32>} : memref<8x32xf32, #tpu.memory_space<vmem>>, vector<8x32xf32>,
    %c0_i32_28 = arith.constant 0 : i32
    %42 = arith.cmpi eq, %arg1, %c0_i32_28 : i32
    %43 = arith.extui %42 : i1 to i32
    %c0_i32_29 = arith.constant 0 : i32
    %44 = arith.cmpi ne, %43, %c0_i32_29 : i32
    scf.if %44 {
      %c0_30 = arith.constant 0 : index
      %c0_31 = arith.constant 0 : index
      %45 = vector.load %arg6[%c0_30, %c0_31] : memref<8x32xf32, #tpu.memory_space<vmem>>, vector<8x32xf32>
      %cst_32 = arith.constant dense<0.000000e+00> : vector<32xf32>
      %46 = vector.multi_reduction <add>, %45, %cst_32 [0] : vector<8x32xf32> to vector<32xf32>
      %47 = vector.shape_cast %46 : vector<32xf32> to vector<1x32xf32>
      %c0_33 = arith.constant 0 : index
      %c0_34 = arith.constant 0 : index
      %48 = vector.load %arg7[%c0_33, %c0_34] : memref<8x32xf32, #tpu.memory_space<vmem>>, vector<8x32xf32>
      %cst_35 = arith.constant dense<0.000000e+00> : vector<32xf32>
      %49 = vector.multi_reduction <add>, %48, %cst_35 [0] : vector<8x32xf32> to vector<32xf32>
      %50 = vector.shape_cast %49 : vector<32xf32> to vector<1x32xf32>
      %c0_36 = arith.constant 0 : index
      %c0_37 = arith.constant 0 : index
      %51 = vector.load %arg8[%c0_36, %c0_37] : memref<8x32xf32, #tpu.memory_space<vmem>>, vector<8x32xf32>
      %cst_38 = arith.constant dense<0.000000e+00> : vector<32xf32>
      %52 = vector.multi_reduction <add>, %51, %cst_38 [0] : vector<8x32xf32> to vector<32xf32>
      %53 = vector.shape_cast %52 : vector<32xf32> to vector<1x32xf32>
      %c0_39 = arith.constant 0 : index
      %c0_40 = arith.constant 0 : index
      %54 = vector.load %arg9[%c0_39, %c0_40] : memref<8x32xf32, #tpu.memory_space<vmem>>, vector<8x32xf32>
      %cst_41 = arith.constant dense<0.000000e+00> : vector<32xf32>
      %55 = vector.multi_reduction <add>, %54, %cst_41 [0] : vector<8x32xf32> to vector<32xf32>
      %56 = vector.shape_cast %55 : vector<32xf32> to vector<1x32xf32>
      %c0_42 = arith.constant 0 : index
      %c0_43 = arith.constant 0 : index
      %57 = vector.load %arg10[%c0_42, %c0_43] : memref<8x32xf32, #tpu.memory_space<vmem>>, vector<8x32xf32>
      %cst_44 = arith.constant dense<0.000000e+00> : vector<32xf32>
      %58 = vector.multi_reduction <add>, %57, %cst_44 [0] : vector<8x32xf32> to vector<32xf32>
      %59 = vector.shape_cast %58 : vector<32xf32> to vector<1x32xf32>
      %60 = arith.mulf %53, %53 : vector<1x32xf32>
      %cst_45 = arith.constant 6.250000e-02 : f32
      %61 = vector.broadcast %cst_45 : f32 to vector<1x32xf32>
      %62 = arith.mulf %60, %61 : vector<1x32xf32>
      %63 = arith.subf %56, %62 : vector<1x32xf32>
      %cst_46 = arith.constant 0.0666666701 : f32
      %64 = vector.broadcast %cst_46 : f32 to vector<1x32xf32>
      %65 = arith.mulf %63, %64 : vector<1x32xf32>
      %66 = math.rsqrt %65 : vector<1x32xf32>
      %cst_47 = arith.constant 1.000000e+00 : f32
      %67 = vector.broadcast %cst_47 : f32 to vector<8x128xf32>
      %c0_48 = arith.constant 0 : index
      %c0_49 = arith.constant 0 : index
      %68 = vector.load %arg6[%c0_48, %c0_49] : memref<8x32xf32, #tpu.memory_space<vmem>>, vector<8x32xf32>
      %cst_50 = arith.constant dense<0.000000e+00> : vector<32x128xf32>
      %69 = tpu.matmul %68, %67, %cst_50 {dimension_numbers = #tpu.dot_dimension_numbers<[0], [0], [1], [1], [0, 1, 1, 1], [], []>} : vector<8x32xf32>, vector<8x128xf32>, vector<32x128xf32> -> vector<32x128xf32>
      %70 = vector.extract_strided_slice %69 {offsets = [0, 0], sizes = [32, 1], strides = [1, 1]} : vector<32x128xf32> to vector<32x1xf32>
      %c0_51 = arith.constant 0 : index
      %c0_52 = arith.constant 0 : index
      %71 = vector.load %arg7[%c0_51, %c0_52] : memref<8x32xf32, #tpu.memory_space<vmem>>, vector<8x32xf32>
      %cst_53 = arith.constant dense<0.000000e+00> : vector<32x128xf32>
      %72 = tpu.matmul %71, %67, %cst_53 {dimension_numbers = #tpu.dot_dimension_numbers<[0], [0], [1], [1], [0, 1, 1, 1], [], []>} : vector<8x32xf32>, vector<8x128xf32>, vector<32x128xf32> -> vector<32x128xf32>
      %73 = vector.extract_strided_slice %72 {offsets = [0, 0], sizes = [32, 1], strides = [1, 1]} : vector<32x128xf32> to vector<32x1xf32>
      %74 = arith.mulf %70, %70 : vector<32x1xf32>
      %cst_54 = arith.constant 6.250000e-02 : f32
      %75 = vector.broadcast %cst_54 : f32 to vector<32x1xf32>
      %76 = arith.mulf %74, %75 : vector<32x1xf32>
      %77 = arith.subf %73, %76 : vector<32x1xf32>
      %cst_55 = arith.constant 0.0666666701 : f32
      %78 = vector.broadcast %cst_55 : f32 to vector<32x1xf32>
      %79 = arith.mulf %77, %78 : vector<32x1xf32>
      %80 = math.rsqrt %79 : vector<32x1xf32>
      %c0_56 = arith.constant 0 : index
      %c0_57 = arith.constant 0 : index
      %81 = vector.load %arg5[%c0_56, %c0_57] : memref<32x32xf32, #tpu.memory_space<vmem>>, vector<32x32xf32>
      %cst_58 = arith.constant 6.250000e-02 : f32
      %82 = vector.broadcast %cst_58 : f32 to vector<1x32xf32>
      %83 = arith.mulf %53, %82 : vector<1x32xf32>
      %84 = vector.broadcast %70 : vector<32x1xf32> to vector<32x32xf32>
      %85 = vector.broadcast %83 : vector<1x32xf32> to vector<32x32xf32>
      %86 = arith.mulf %84, %85 : vector<32x32xf32>
      %87 = arith.subf %81, %86 : vector<32x32xf32>
      %88 = vector.broadcast %80 : vector<32x1xf32> to vector<32x32xf32>
      %89 = arith.mulf %87, %88 : vector<32x32xf32>
      %cst_59 = arith.constant 6.250000e-02 : f32
      %90 = vector.broadcast %cst_59 : f32 to vector<1x32xf32>
      %91 = arith.mulf %66, %90 : vector<1x32xf32>
      %92 = vector.broadcast %91 : vector<1x32xf32> to vector<32x32xf32>
      %93 = arith.mulf %89, %92 : vector<32x32xf32>
      %94 = arith.mulf %93, %93 : vector<32x32xf32>
      %95 = vector.shape_cast %94 : vector<32x32xf32> to vector<1x32x32xf32>
      %cst_60 = arith.constant dense<0.000000e+00> : vector<1xf32>
      %96 = vector.multi_reduction <add>, %95, %cst_60 [1, 2] : vector<1x32x32xf32> to vector<1xf32>
      %97 = vector.shape_cast %96 : vector<1xf32> to vector<1x1x1xf32>
      %98 = vector.extract %97[0, 0, 0] : f32 from vector<1x1x1xf32>
      %99 = arith.mulf %47, %47 : vector<1x32xf32>
      %cst_61 = arith.constant 6.250000e-02 : f32
      %100 = vector.broadcast %cst_61 : f32 to vector<1x32xf32>
      %101 = arith.mulf %99, %100 : vector<1x32xf32>
      %102 = arith.subf %50, %101 : vector<1x32xf32>
      %cst_62 = arith.constant 0.0666666701 : f32
      %103 = vector.broadcast %cst_62 : f32 to vector<1x32xf32>
      %104 = arith.mulf %102, %103 : vector<1x32xf32>
      %105 = math.rsqrt %104 : vector<1x32xf32>
      %106 = arith.mulf %47, %53 : vector<1x32xf32>
      %cst_63 = arith.constant 6.250000e-02 : f32
      %107 = vector.broadcast %cst_63 : f32 to vector<1x32xf32>
      %108 = arith.mulf %106, %107 : vector<1x32xf32>
      %109 = arith.subf %59, %108 : vector<1x32xf32>
      %110 = arith.mulf %109, %105 : vector<1x32xf32>
      %cst_64 = arith.constant 6.250000e-02 : f32
      %111 = vector.broadcast %cst_64 : f32 to vector<1x32xf32>
      %112 = arith.mulf %66, %111 : vector<1x32xf32>
      %113 = arith.mulf %110, %112 : vector<1x32xf32>
      %cst_65 = arith.constant 1.000000e+00 : f32
      %114 = vector.broadcast %cst_65 : f32 to vector<1x32xf32>
      %115 = arith.subf %113, %114 : vector<1x32xf32>
      %116 = arith.mulf %115, %115 : vector<1x32xf32>
      %cst_66 = arith.constant 5.000000e-03 : f32
      %117 = vector.broadcast %cst_66 : f32 to vector<1x32xf32>
      %118 = arith.mulf %117, %113 : vector<1x32xf32>
      %119 = arith.mulf %118, %113 : vector<1x32xf32>
      %120 = arith.subf %116, %119 : vector<1x32xf32>
      %121 = vector.shape_cast %120 : vector<1x32xf32> to vector<1x1x32xf32>
      %cst_67 = arith.constant dense<0.000000e+00> : vector<1xf32>
      %122 = vector.multi_reduction <add>, %121, %cst_67 [1, 2] : vector<1x1x32xf32> to vector<1xf32>
      %123 = vector.shape_cast %122 : vector<1xf32> to vector<1x1x1xf32>
      %124 = vector.extract %123[0, 0, 0] : f32 from vector<1x1x1xf32>
      %cst_68 = arith.constant 5.000000e-03 : f32
      %125 = arith.mulf %cst_68, %98 : f32
      %126 = arith.addf %125, %124 : f32
      %127 = tpu.iota {dimensions = array<i32: 0>} : vector<8x128xi32>
      %128 = tpu.iota {dimensions = array<i32: 1>} : vector<8x128xi32>
      %c0_i32_69 = arith.constant 0 : i32
      %129 = vector.broadcast %c0_i32_69 : i32 to vector<8x128xi32>
      %130 = arith.cmpi eq, %127, %129 : vector<8x128xi32>
      %c0_i32_70 = arith.constant 0 : i32
      %131 = vector.broadcast %c0_i32_70 : i32 to vector<8x128xi32>
      %132 = arith.cmpi eq, %128, %131 : vector<8x128xi32>
      %133 = arith.andi %130, %132 : vector<8x128xi1>
      %cst_71 = arith.constant 0.000000e+00 : f32
      %134 = vector.broadcast %126 : f32 to vector<8x128xf32>
      %135 = vector.broadcast %cst_71 : f32 to vector<8x128xf32>
      %136 = arith.select %133, %134, %135 : vector<8x128xi1>, vector<8x128xf32>
      %c0_72 = arith.constant 0 : index
      %c0_73 = arith.constant 0 : index
      %137 = vector.load %arg4[%c0_72, %c0_73] : memref<8x128xf32, #tpu.memory_space<vmem>>, vector<8x128xf32>
      tpu.vector_store %arg4[%c0_72, %c0_73], %136 {strides = array<i32>} : memref<8x128xf32, #tpu.memory_space<vmem>>, vector<8x128xf32>,
    } else {
    }
    return
  }
  func.func @transform_0(%arg0: i32, %arg1: i32) -> (i32, i32) {
    %c0_i32 = arith.constant 0 : i32
    %c0_i32_0 = arith.constant 0 : i32
    return %arg1, %c0_i32 : i32, i32
  }
  func.func @transform_1(%arg0: i32, %arg1: i32) -> (i32, i32) {
    %c0_i32 = arith.constant 0 : i32
    return %arg1, %arg0 : i32, i32
  }
  func.func @transform_2(%arg0: i32, %arg1: i32) -> (i32, i32) {
    %c0_i32 = arith.constant 0 : i32
    %c0_i32_0 = arith.constant 0 : i32
    return %arg0, %c0_i32 : i32, i32
  }
}

</mosaic_0001>

<bundles_post_ra>
// kernel: tpu_custom_call.1
= control target key start
LH: loop header
LB: loop body
LE: loop exit
PB: predicated region body
PF: predicated region fallthrough
CT: control target
= control target key end

     0   :  { %7 = vsyncpa [#allocation9], 0  ;;  %s920_s0 = inlined_call_operand.hbm [shape: f32[16,32], index: 0, kind: input, shape index: {}]   ;;  %s921_s1 = inlined_call_operand.hbm [shape: f32[16,32], index: 1, kind: input, shape index: {}]   ;;  %s922_s2 = inlined_call_operand.hbm [shape: f32[8,128], index: 2, kind: output, shape index: {}]  }
   0x1   :  { %8 = vsyncpa [#allocation12], 0 }
   0x2   :  { %9 = vsyncpa [#allocation10], 0  ;;  %s839_s9 = smov [#allocation8]  }
   0x3   :  { %s15_s10 = sshll.u32 %s839_s9, 4  ;;  %s16_s10 = int_to_ptr.vmem [resolvable:$true] %s15_s10 }
   0x4   :  { %s781_s11 = scalar_lea.vmem %s16_s10, 256  ;;  %p786_p1 = scmp.lt.s32.totalorder %s16_s10, %s16_s10 }
   0x5   :  { %p782_p0 = scmp.ne.s32.totalorder %s16_s10, %s781_s11  ;;  %p787_p2 = scmp.lt.s32.totalorder %s781_s11, %s781_s11 }
   0x7   :  { %p788_p3 = por %p787_p2, %p786_p1 }
   0x9   :  { %p789_p4 = pnand %p788_p3, %p782_p0 }
   0xb   :  { %792 = shalt.err (!%p789_p4)
}
   0xc   :  { %s840_s12 = smov 128   ;;  %s841_s13 = smov 8  }
   0xd   :  { %21 = dma.hbm_to_vmem [thread:$0]  %s920_s0, 256, %s16_s10, [#allocation9], %s840_s12, %s840_s12, %s841_s13  }
   0xe   :  { %s842_s16 = smov [#allocation11]  }
   0xf   :  { %s27_s17 = sshll.u32 %s842_s16, 4  ;;  %s28_s17 = int_to_ptr.vmem [resolvable:$true] %s27_s17 }
  0x10   :  { %s801_s18 = scalar_lea.vmem %s28_s17, 256  ;;  %p806_p6 = scmp.lt.s32.totalorder %s28_s17, %s28_s17 }
  0x11   :  { %p802_p5 = scmp.ne.s32.totalorder %s28_s17, %s801_s18  ;;  %p807_p7 = scmp.lt.s32.totalorder %s801_s18, %s801_s18 }
  0x13   :  { %p808_p8 = por %p807_p7, %p806_p6 }
  0x15   :  { %p809_p9 = pnand %p808_p8, %p802_p5 }
  0x17   :  { %812 = shalt.err (!%p809_p9)
}
  0x18   :  { %33 = dma.hbm_to_vmem [thread:$0]  %s921_s1, 256, %s28_s17, [#allocation12], %s840_s12, %s840_s12, %s841_s13  }
  0x19   :  { %833 = dma.done.wait [#allocation9], 256  }
  0x1a   :  { %834 = vsyncadd [#allocation9], 4294967040 }
  0x1b   :  { %835 = dma.done.wait [#allocation12], 256  }
  0x1c   :  { %836 = vsyncadd [#allocation12], 4294967040  ;;  %vm44_vm0 = vcmask 261120   ;;  %v843_v0 = vmov 0.0   ;;  %v54_v1 = vld [vmem:[#allocation8] sm:$0xff]  ;;  %v55_v2 = vld [vmem:[#allocation8 + $0x8] sm:$0xff] }
  0x1d   :  { %49 = vst.msk [vmem:[#allocation3] sm:$0xff] %vm44_vm0, %v843_v0  ;;  %50 = vst.msk [vmem:[#allocation4] sm:$0xff] %vm44_vm0, %v843_v0  ;;  %62 = vxpose.xlu0.b32.start [1/2] (short) (narrow) %v54_v1, 32  ;;  %v206_v3 = vmul.f32 %v54_v1, %v54_v1  ;;  %v207_v4 = vmul.f32 %v55_v2, %v55_v2  ;;  %v202_v6 = vadd.f32 %v55_v2, %v54_v1  ;;  %v57_v7 = vld [vmem:[#allocation11 + $0x8] sm:$0xff]  ;;  %v56_v11 = vld [vmem:[#allocation11] sm:$0xff]  ;;  %v844_v27 = vmov 1.0  }
  0x1e   :  { %45 = vst.msk [vmem:[#allocation2] sm:$0xff] %vm44_vm0, %v843_v0  ;;  %46 = vst.msk [vmem:[#allocation2 + $0x8] sm:$0xff] %vm44_vm0, %v843_v0  ;;  %719 = vmatprep.subr.mxu0 %v57_v7  ;;  %v217_v9 = vmul.f32 %v57_v7, %v57_v7  ;;  %v223_v10 = vmul.f32 %v57_v7, %v55_v2  ;;  %v212_v15 = vadd.f32 %v57_v7, %v56_v11  ;;  %vm94_vm1 = vcmask 130048   ;;  %s846_s22 = smov [#allocation13]  }
  0x1f   :  { %47 = vst.msk [vmem:[#allocation2 + $0x10] sm:$0xff] %vm44_vm0, %v843_v0  ;;  %48 = vst.msk [vmem:[#allocation2 + $0x18] sm:$0xff] %vm44_vm0, %v843_v0  ;;  %v208_v14 = vadd.f32 %v207_v4, %v206_v3  ;;  %720 = vmatpush3.msra.mxu0 %v57_v7  ;;  %v216_v16 = vmul.f32 %v56_v11, %v56_v11  ;;  %v222_v18 = vmul.f32 %v56_v11, %v54_v1  ;;  %vm307_vm2 = vcmask 64512   ;;  %s680_s23 = sshll.u32 %s846_s22, 4  ;;  %s681_s23 = int_to_ptr.vmem [resolvable:$true] %s680_s23 }
  0x20   :  { %51 = vst.msk [vmem:[#allocation5] sm:$0xff] %vm44_vm0, %v843_v0  ;;  %52 = vst.msk [vmem:[#allocation6] sm:$0xff] %vm44_vm0, %v843_v0  ;;  %721 = vmatprep.subr.mxu0 %v56_v11  ;;  %745 = vmatprep.subr.mxu1 %v844_v27  ;;  %v845_v58 = vmov 0   ;;  %vm651_vm3 = vcmask 253952   ;;  %s813_s25 = scalar_lea.vmem %s681_s23, 128  ;;  %p818_p11 = scmp.lt.s32.totalorder %s681_s23, %s681_s23 }
  0x21   :  { %53 = vst.msk [vmem:[#allocation7] sm:$0xff] %vm44_vm0, %v843_v0  ;;  %63 = vxpose.xlu0.b32.end [2/2] (short) (narrow) %v55_v2, 32  ;;  %v218_v21 = vadd.f32 %v217_v9, %v216_v16  ;;  %722 = vmatpush3.msra.mxu0 %v56_v11  ;;  %v224_v23 = vadd.f32 %v223_v10, %v222_v18  ;;  %p814_p10 = scmp.ne.s32.totalorder %s681_s23, %s813_s25  ;;  %p819_p12 = scmp.lt.s32.totalorder %s813_s25, %s813_s25 }
  0x22   :  { %729 = vmatprep.subr.mxu0 %v844_v27  ;;  %746 = vmatpush3.msra.mxu1 %v844_v27 }
  0x23   :  { %737 = vmatprep.subr.mxu1 %v844_v27  ;;  %p820_p13 = por %p819_p12, %p818_p11 }
  0x24   :  { %v201_v5 = vld [vmem:[#allocation3] sm:$0xff]  ;;  %v205_v8 = vld [vmem:[#allocation4] sm:$0xff] }
  0x25   :  { %v203_v13 = vadd.f32 %v202_v6, %v201_v5  ;;  %v209_v19 = vadd.f32 %v208_v14, %v205_v8  ;;  %v59_v59 = vld [vmem:[#allocation2 + $0x8] sm:$0xff]  ;;  %v58_v61 = vld [vmem:[#allocation2] sm:$0xff]  ;;  %p821_p0 = pnand %p820_p13, %p814_p10 }
  0x26   :  { %v61_v1 = vld [vmem:[#allocation2 + $0x18] sm:$0xff]  ;;  %v60_v3 = vld [vmem:[#allocation2 + $0x10] sm:$0xff] }
  0x27   :  { %v211_v12 = vld [vmem:[#allocation5] sm:$0xff]  ;;  %v215_v17 = vld [vmem:[#allocation6] sm:$0xff]  ;;  %204 = vst.msk [vmem:[#allocation3] sm:$0xff] %vm44_vm0, %v203_v13  ;;  %210 = vst.msk [vmem:[#allocation4] sm:$0xff] %vm44_vm0, %v209_v19 }
  0x28   :  { %v213_v20 = vadd.f32 %v212_v15, %v211_v12  ;;  %v221_v22 = vld [vmem:[#allocation7] sm:$0xff]  ;;  %v219_v24 = vadd.f32 %v218_v21, %v215_v17 }
  0x29   :  { %v225_v25 = vadd.f32 %v224_v23, %v221_v22 }
  0x2a   :  { %214 = vst.msk [vmem:[#allocation5] sm:$0xff] %vm44_vm0, %v213_v20  ;;  %220 = vst.msk [vmem:[#allocation6] sm:$0xff] %vm44_vm0, %v219_v24 }
  0x2b   :  { %226 = vst.msk [vmem:[#allocation7] sm:$0xff] %vm44_vm0, %v225_v25 }
  0x2e   :  { %v230_v26 = vld [vmem:[#allocation3] sm:$0xff]  ;;  %v238_v30 = vld [vmem:[#allocation4] sm:$0xff] }
  0x2f   :  { %275 = vxpose.xlu1.b32.start.end [1/1] (short) (narrow) %v230_v26, 32  ;;  %v231_v28 = vsel %vm44_vm0, %v230_v26, 0.0  ;;  %v239_v31 = vsel %vm44_vm0, %v238_v30, 0.0 }
  0x30   :  { %v232_v29 = vrot.slane %v231_v28, 4  ;;  %v240_v33 = vrot.slane %v239_v31, 4 }
  0x31   :  { %v246_v6 = vld [vmem:[#allocation5] sm:$0xff]  ;;  %v254_v12 = vld [vmem:[#allocation6] sm:$0xff] }
  0x32   :  { %v233_v32 = vadd.f32 %v232_v29, %v231_v28  ;;  %v241_v35 = vadd.f32 %v240_v33, %v239_v31  ;;  %v247_v9 = vsel %vm44_vm0, %v246_v6, 0.0  ;;  %v255_v13 = vsel %vm44_vm0, %v254_v12, 0.0 }
  0x33   :  { %v248_v11 = vrot.slane %v247_v9, 4  ;;  %v256_v17 = vrot.slane %v255_v13, 4 }
  0x34   :  { %v234_v34 = vrot.slane %v233_v32, 2  ;;  %v242_v37 = vrot.slane %v241_v35, 2 }
  0x35   :  { %v249_v15 = vadd.f32 %v248_v11, %v247_v9  ;;  %v257_v21 = vadd.f32 %v256_v17, %v255_v13 }
  0x36   :  { %v235_v36 = vadd.f32 %v234_v34, %v233_v32  ;;  %v243_v39 = vadd.f32 %v242_v37, %v241_v35 }
  0x37   :  { %v250_v19 = vrot.slane %v249_v15, 2  ;;  %v258_v29 = vrot.slane %v257_v21, 2 }
  0x38   :  { %v236_v38 = vrot.slane %v235_v36, 1  ;;  %v244_v41 = vrot.slane %v243_v39, 1 }
  0x39   :  { %v251_v25 = vadd.f32 %v250_v19, %v249_v15  ;;  %v259_v37 = vadd.f32 %v258_v29, %v257_v21 }
  0x3a   :  { %v884_v40 = vadd.f32 %v236_v38, %v235_v36  ;;  %v888_v43 = vadd.f32 %v244_v41, %v243_v39  ;;  %v262_v36 = vld [vmem:[#allocation7] sm:$0xff] }
  0x3b   :  { %v252_v33 = vrot.slane %v251_v25, 1  ;;  %v263_v38 = vsel %vm44_vm0, %v262_v36, 0.0 }
  0x3c   :  { %v636_v42 = vmul.f32 %v884_v40, %v884_v40  ;;  %405 = vxpose.xlu1.b32.start.end [1/1] (short) (narrow) %v238_v30, 32  ;;  %v264_v41 = vrot.slane %v263_v38, 4 }
  0x3e   :  { %v890_v44 = vmul.f32 0.0625, %v636_v42 }
  0x40   :  { %v638_v45 = vsub.f32 %v888_v43, %v890_v44  ;;  %v253_v43 = vadd.f32 %v252_v33, %v251_v25 }
  0x42   :  { %v639_v23 = vmul.f32 0.06666667, %v638_v45  ;;  %v558_v15 = vmul.f32 0.0625, %v253_v43 }
  0x44   :  { %761 = vrsqrt.f32 %v639_v23 }
  0x4a   :  { %760 = vset.pattern.permute.xlu0 %v845_v58 }
  0x5a   :  { %759 = vset.pattern.permute.xlu1 %v845_v58  ;;  %v641_v58 = vmul.f32 %v253_v43, %v884_v40 }
  0x99   :  { %v78_v46 = vpop.trf.xlu0 }
  0x9a   :  { %723 = vmatprep.mubr.msk.f32.mxu0 %vm94_vm1, %v78_v46  ;;  %v265_v46 = vadd.f32 %v264_v41, %v263_v38 }
  0x9d   :  { %v79_v47 = vpop.trf.xlu0 }
  0x9e   :  { %724 = vmatmul.mubr.msk.f32.vlgmr.msra.gmra.mxu0 %vm94_vm1, %v79_v47 }
  0x9f   :  { %730 = vmatpush3.msra.mxu0 %v844_v27 }
  0xa1   :  { %v80_v48 = vpop.trf.xlu0 }
  0xa2   :  { %726 = vmatprep.mubr.msk.f32.mxu0 %vm94_vm1, %v80_v48  ;;  %v270_v48 = vmul.f32 %v253_v43, %v253_v43 }
  0xa5   :  { %v81_v49 = vpop.trf.xlu0 }
  0xa6   :  { %727 = vmatmul.mubr.msk.f32.gmra.mxu0 %vm94_vm1, %v81_v49  ;;  %v260_v49 = vrot.slane %v259_v37, 1 }
  0xab   :  { %v291_v50 = vpop.trf.xlu1 }
  0xac   :  { %731 = vmatprep.mubr.msk.f32.mxu0 %vm307_vm2, %v291_v50 }
  0xaf   :  { %v292_v51 = vpop.trf.xlu1 }
  0xb0   :  { %732 = vmatmul.mubr.msk.f32.vlgmr.msra.gmra.mxu0 %vm307_vm2, %v292_v51 }
  0xb3   :  { %v293_v52 = vpop.trf.xlu1 }
  0xb4   :  { %734 = vmatprep.mubr.msk.f32.mxu1 %vm307_vm2, %v293_v52  ;;  %v266_v52 = vrot.slane %v265_v46, 2 }
  0xb7   :  { %v294_v53 = vpop.trf.xlu1 }
  0xb8   :  { %735 = vmatmul.mubr.msk.f32.vlgmr.msra.gmra.mxu1 %vm307_vm2, %v294_v53 }
  0xb9   :  { %738 = vmatpush3.msra.mxu1 %v844_v27 }
  0xbb   :  { %v421_v54 = vpop.trf.xlu1 }
  0xbc   :  { %739 = vmatprep.mubr.msk.f32.mxu1 %vm307_vm2, %v421_v54  ;;  %v267_v54 = vadd.f32 %v266_v52, %v265_v46 }
  0xbf   :  { %v422_v55 = vpop.trf.xlu1 }
  0xc0   :  { %740 = vmatmul.mubr.msk.f32.vlgmr.msra.gmra.mxu1 %vm307_vm2, %v422_v55  ;;  %v271_v55 = vmul.f32 0.0625, %v270_v48 }
  0xc3   :  { %v423_v56 = vpop.trf.xlu1 }
  0xc4   :  { %742 = vmatprep.mubr.msk.f32.mxu1 %vm307_vm2, %v423_v56  ;;  %v261_v56 = vadd.f32 %v260_v49, %v259_v37 }
  0xc7   :  { %v424_v57 = vpop.trf.xlu1 }
  0xc8   :  { %743 = vmatmul.mubr.msk.f32.gmra.mxu1 %vm307_vm2, %v424_v57  ;;  %v268_v57 = vrot.slane %v267_v54, 1 }
 0x15e   :  { %v725_v60 = vpop.f32.mrf.mxu0 }
 0x15f   :  { %v193_v62 = vadd.f32 %v725_v60, %v59_v59  ;;  %v762_v59 = vpop.eup %761  ;;  %v269_v60 = vadd.f32 %v268_v57, %v267_v54 }
 0x160   :  { %v173_v63 = vpop.f32.mrf.mxu0 }
 0x161   :  { %198 = vst.msk [vmem:[#allocation2 + $0x8] sm:$0xff] %vm44_vm0, %v193_v62  ;;  %v192_v0 = vadd.f32 %v173_v63, %v58_v61  ;;  %v642_v61 = vmul.f32 0.0625, %v641_v58  ;;  %v272_v63 = vsub.f32 %v261_v56, %v271_v55 }
 0x163   :  { %197 = vst.msk [vmem:[#allocation2] sm:$0xff] %vm44_vm0, %v192_v0  ;;  %v643_v0 = vsub.f32 %v269_v60, %v642_v61 }
 0x166   :  { %v728_v2 = vpop.f32.mrf.mxu0 }
 0x167   :  { %v195_v4 = vadd.f32 %v728_v2, %v61_v1  ;;  %v644_v2 = vmul.f32 %v762_v59, %v643_v0 }
 0x168   :  { %v183_v5 = vpop.f32.mrf.mxu0 }
 0x169   :  { %200 = vst.msk [vmem:[#allocation2 + $0x18] sm:$0xff] %vm44_vm0, %v195_v4  ;;  %v194_v7 = vadd.f32 %v183_v5, %v60_v3  ;;  %v273_v3 = vmul.f32 0.06666667, %v272_v63 }
 0x16a   :  { %v554_v23 = vld [vmem:[#allocation2] sm:$0xff] }
 0x16b   :  { %199 = vst.msk [vmem:[#allocation2 + $0x10] sm:$0xff] %vm44_vm0, %v194_v7 }
 0x170   :  { %v733_v8 = vpop.f32.mrf.mxu0 }
 0x171   :  { %566 = vperm.xlu1 %759, %v733_v8   ;;  %v535_v18 = vmul.f32 %v733_v8, %v733_v8 }
 0x172   :  { %v386_v10 = vpop.f32.mrf.mxu0  ;;  %v556_v36 = vld [vmem:[#allocation2 + $0x10] sm:$0xff] }
 0x173   :  { %561 = vperm.xlu0 %760, %v386_v10   ;;  %v534_v20 = vmul.f32 %v386_v10, %v386_v10  ;;  %v539_v22 = vmul.f32 0.0625, %v535_v18 }
 0x175   :  { %v538_v26 = vmul.f32 0.0625, %v534_v20 }
 0x178   :  { %v736_v14 = vpop.f32.mrf.mxu1 }
 0x179   :  { %576 = vperm.xlu1 %759, %v736_v14   ;;  %v537_v30 = vmul.f32 %v736_v14, %v736_v14 }
 0x17a   :  { %v396_v16 = vpop.f32.mrf.mxu1 }
 0x17b   :  { %571 = vperm.xlu0 %760, %v396_v16   ;;  %v536_v34 = vmul.f32 %v396_v16, %v396_v16  ;;  %v541_v39 = vmul.f32 0.0625, %v537_v30 }
 0x17d   :  { %v540_v44 = vmul.f32 0.0625, %v536_v34 }
 0x180   :  { %v741_v24 = vpop.f32.mrf.mxu1 }
 0x181   :  { %v543_v27 = vsub.f32 %v741_v24, %v539_v22  ;;  %v555_v22 = vld [vmem:[#allocation2 + $0x8] sm:$0xff] }
 0x182   :  { %v515_v28 = vpop.f32.mrf.mxu1 }
 0x183   :  { %v547_v31 = vmul.f32 0.06666667, %v543_v27  ;;  %v542_v32 = vsub.f32 %v515_v28, %v538_v26 }
 0x185   :  { %763 = vrsqrt.f32 %v547_v31  ;;  %v546_v35 = vmul.f32 0.06666667, %v542_v32  ;;  %v557_v32 = vld [vmem:[#allocation2 + $0x18] sm:$0xff] }
 0x187   :  { %765 = vrsqrt.f32 %v546_v35 }
 0x188   :  { %v744_v42 = vpop.f32.mrf.mxu1 }
 0x189   :  { %v545_v45 = vsub.f32 %v744_v42, %v541_v39 }
 0x18a   :  { %v525_v47 = vpop.f32.mrf.mxu1 }
 0x18b   :  { %v549_v50 = vmul.f32 0.06666667, %v545_v45  ;;  %v544_v51 = vsub.f32 %v525_v47, %v540_v44 }
 0x18d   :  { %767 = vrsqrt.f32 %v549_v50  ;;  %v548_v53 = vmul.f32 0.06666667, %v544_v51 }
 0x18f   :  { %769 = vrsqrt.f32 %v548_v53 }
 0x190   :  { %771 = vrsqrt.f32 %v273_v3 }
 0x192   :  { %v764_v62 = vpop.eup %763 }
 0x193   :  { %594 = vperm.xlu1 %759, %v764_v62  }
 0x194   :  { %v766_v1 = vpop.eup %765 }
 0x195   :  { %589 = vperm.xlu0 %760, %v766_v1  }
 0x19a   :  { %v768_v4 = vpop.eup %767 }
 0x19b   :  { %604 = vperm.xlu1 %759, %v768_v4  }
 0x19c   :  { %v770_v5 = vpop.eup %769 }
 0x19d   :  { %599 = vperm.xlu0 %760, %v770_v5   ;;  %v772_v6 = vpop.eup %771  ;;  %v664_v5 = vlaneseq }
 0x19e   :  { %v611_v7 = vmul.f32 0.0625, %v772_v6 }
 0x19f   :  { %v665_v6 = vshrl.u32 %v664_v5, 7 }
 0x1a0   :  { %v645_v8 = vmul.f32 %v644_v2, %v611_v7 }
 0x1a1   :  { %vm668_vm4 = vcmp.eq.s32.totalorder %v665_v6, 0 }
 0x1a2   :  { %v702_v40 = vadd.f32 -1.0, %v645_v8  ;;  %v648_v9 = vmul.f32 0.005, %v645_v8 }
 0x1a4   :  { %v647_v10 = vmul.f32 %v702_v40, %v702_v40  ;;  %v649_v11 = vmul.f32 %v648_v9, %v645_v8 }
 0x1a6   :  { %v650_v12 = vsub.f32 %v647_v10, %v649_v11 }
 0x1a8   :  { %v652_v13 = vsel %vm651_vm3, %v650_v12, 0.0 }
 0x1bf   :  { %653 = vadd.xlane.f32.xlu1 %v652_v13 }
 0x1ec   :  { %v567_v14 = vpop.permute.xlu1 %566 }
 0x1ed   :  { %v580_v18 = vmul.f32 %v567_v14, %v558_v15 }
 0x1ee   :  { %v562_v16 = vpop.permute.xlu0 %561 }
 0x1ef   :  { %v579_v19 = vmul.f32 %v562_v16, %v558_v15  ;;  %v584_v24 = vsub.f32 %v555_v22, %v580_v18 }
 0x1f1   :  { %v583_v25 = vsub.f32 %v554_v23, %v579_v19 }
 0x1f4   :  { %v577_v17 = vpop.permute.xlu1 %576 }
 0x1f5   :  { %v582_v27 = vmul.f32 %v577_v17, %v558_v15 }
 0x1f6   :  { %v572_v20 = vpop.permute.xlu0 %571 }
 0x1f7   :  { %v581_v30 = vmul.f32 %v572_v20, %v558_v15  ;;  %v586_v34 = vsub.f32 %v557_v32, %v582_v27 }
 0x1f9   :  { %v585_v39 = vsub.f32 %v556_v36, %v581_v30 }
 0x20e   :  { %v595_v21 = vpop.permute.xlu1 %594 }
 0x20f   :  { %v608_v28 = vmul.f32 %v595_v21, %v584_v24 }
 0x210   :  { %v590_v26 = vpop.permute.xlu0 %589 }
 0x211   :  { %v607_v29 = vmul.f32 %v590_v26, %v583_v25  ;;  %v613_v33 = vmul.f32 %v611_v7, %v608_v28 }
 0x213   :  { %v612_v31 = vmul.f32 %v611_v7, %v607_v29  ;;  %v617_v42 = vmul.f32 %v613_v33, %v613_v33 }
 0x215   :  { %v616_v37 = vmul.f32 %v612_v31, %v612_v31  ;;  %v621_v47 = vsel %vm44_vm0, %v617_v42, 0.0 }
 0x216   :  { %v605_v35 = vpop.permute.xlu1 %604 }
 0x217   :  { %v610_v38 = vmul.f32 %v605_v35, %v586_v34  ;;  %v620_v45 = vsel %vm44_vm0, %v616_v37, 0.0 }
 0x218   :  { %v600_v41 = vpop.permute.xlu0 %599  ;;  %v622_v50 = vadd.f32 %v621_v47, %v620_v45 }
 0x219   :  { %v615_v43 = vmul.f32 %v611_v7, %v610_v38  ;;  %v609_v44 = vmul.f32 %v600_v41, %v585_v39 }
 0x21b   :  { %v614_v46 = vmul.f32 %v611_v7, %v609_v44  ;;  %v619_v48 = vmul.f32 %v615_v43, %v615_v43  ;;  %v667_v7 = vand.u32 127, %v664_v5 }
 0x21d   :  { %v618_v49 = vmul.f32 %v614_v46, %v614_v46  ;;  %v625_v53 = vsel %vm44_vm0, %v619_v48, 0.0  ;;  %vm669_vm5 = vcmp.eq.s32.totalorder %v667_v7, 0 }
 0x21e   :  { %vm670_vm6 = vmand %vm668_vm4, %vm669_vm5 }
 0x21f   :  { %v623_v51 = vsel %vm44_vm0, %v618_v49, 0.0 }
 0x220   :  { %v624_v52 = vadd.f32 %v623_v51, %v622_v50 }
 0x222   :  { %v626_v54 = vadd.f32 %v625_v53, %v624_v52 }
 0x224   :  { %627 = vadd.xlane.f32.xlu0 %v626_v54 }
 0x248   :  { %v654_v55 = vpop.xlane.xlu1 %653 }
 0x249   :  { %v655_v56 = vrot.slane %v654_v55, 4 }
 0x24b   :  { %v656_v57 = vadd.f32 %v655_v56, %v654_v55 }
 0x24d   :  { %v657_v58 = vrot.slane %v656_v57, 2 }
 0x24f   :  { %v658_v62 = vadd.f32 %v657_v58, %v656_v57 }
 0x251   :  { %v659_v1 = vrot.slane %v658_v62, 1 }
 0x253   :  { %v660_v4 = vadd.f32 %v659_v1, %v658_v62 }
 0x2ad   :  { %v628_v59 = vpop.xlane.xlu0 %627 }
 0x2ae   :  { %v629_v60 = vrot.slane %v628_v59, 4 }
 0x2b0   :  { %v630_v61 = vadd.f32 %v629_v60, %v628_v59 }
 0x2b2   :  { %v631_v63 = vrot.slane %v630_v61, 2 }
 0x2b4   :  { %v632_v0 = vadd.f32 %v631_v63, %v630_v61 }
 0x2b6   :  { %v633_v2 = vrot.slane %v632_v0, 1 }
 0x2b8   :  { %v634_v3 = vadd.f32 %v633_v2, %v632_v0 }
 0x2ba   :  { %747 = vpush %v634_v3 }
 0x2bb   :  { %749 = vpush %v660_v4 }
 0x2eb   :  { %s748_s0 = spop %747 }
 0x2ec   :  { %s662_s1 = smul.f32 0.005, %s748_s0  ;;  %s750_s21 = spop %749 }
 0x2ee   :  { %s663_s24 = sadd.f32 %s750_s21, %s662_s1 }
 0x2f0   :  { %v671_v8 = vstv %s663_s24 }
 0x2f1   :  { %v672_v40 = vsel %vm670_vm6, %v671_v8, 0.0 }
 0x2f2   :  { %673 = vst [vmem:[#allocation13] sm:$0xff] %v672_v40 }
 0x2f3   :  { %824 = shalt.err (!%p821_p0)
}
 0x2f4   :  { %683 = dma.vmem_to_hbm [thread:$0]  %s681_s23, 128, %s922_s2, [#allocation10]  }
 0x2f5   :  { %837 = dma.done.wait [#allocation10], 128  }
 0x2f6   :  { %838 = vsyncadd [#allocation10], 4294967168 }
 0x2f7   :  { %687 = vsyncpa [#allocation9], 1 }
 0x2f8   :  { %688 = vsyncpa [#allocation12], 1 }
 0x2f9   :  { %689 = vsyncpa [#allocation10], 1 }

</bundles_post_ra>
